<compile_context>
chip_gen: v5e
topology: v5e:2x2
jax: 0.10.0
libtpu: 0.0.40
codegen_flags: <defaults>
</compile_context>

<pallas_src>
import functools

import jax
import jax.numpy as jnp
from jax.experimental import pallas as pl
from jax.experimental.pallas import tpu as pltpu


def _block_kernel(xf_ref, wm_ref, gamma_ref, beta_ref, o_ref, *, W, k, eps):
    # xf_ref:    (N, C, L)     flattened, spatially zero-padded NCHW input
    # wm_ref:    (C, k*k*C)    im2col conv weights (already masked)
    # gamma_ref: (C, 1)        BN scale
    # beta_ref:  (C, 1)        BN shift
    # o_ref:     (N, C, H*W)   output (wrapper reshapes to NCHW for free)
    N, C, HW = o_ref.shape
    p = k // 2

    xf = xf_ref[...].astype(jnp.float32)

    # Column index of every output pixel along the lane axis; used to mask
    # horizontally out-of-image taps that would otherwise wrap across rows.
    wcol = jax.lax.broadcasted_iota(jnp.int32, (1, 1, HW), 2) % W

    # Build the im2col patch tensor: one constant lane-offset slice per tap.
    taps = []
    for kh in range(k):
        for kw in range(k):
            off = kh * W + kw
            sl = xf[:, :, off:off + HW]                     # (N, C, HW)
            dw = kw - p
            if dw != 0:
                valid = jnp.logical_and(wcol + dw >= 0, wcol + dw < W)
                sl = jnp.where(valid, sl, 0.0)
            taps.append(sl)
    patches = jnp.concatenate(taps, axis=1)                 # (N, k*k*C, HW)

    # Single fused contraction over K = k*k*C, batched over N, on the MXU.
    wm = wm_ref[...].astype(jnp.float32)                    # (C, k*k*C)
    wmb = jnp.broadcast_to(wm[None], (N,) + wm.shape)       # (N, C, k*k*C)
    acc = jax.lax.dot_general(
        wmb, patches,
        dimension_numbers=(((2,), (1,)), ((0,), (0,))),
        preferred_element_type=jnp.float32)                 # (N, C, HW)

    # BatchNorm2d (training mode): per-channel batch stats over (N, H, W),
    # biased variance, eps inside the rsqrt.  `centered` is reused for both
    # the variance and the normalization.
    cnt = float(N * HW)
    mean = jnp.sum(jnp.sum(acc, axis=2, keepdims=True),
                   axis=0, keepdims=True) / cnt             # (1, C, 1)
    centered = acc - mean
    var = jnp.sum(jnp.sum(centered * centered, axis=2, keepdims=True),
                  axis=0, keepdims=True) / cnt              # (1, C, 1)
    inv = jax.lax.rsqrt(var + eps)
    scale = gamma_ref[...][None] * inv                      # (1, C, 1)
    shift = beta_ref[...][None]                             # (1, C, 1)

    y = centered * scale + shift
    o_ref[...] = jnp.maximum(y, 0.0).astype(o_ref.dtype)    # ReLU


def block_forward(x_nchw, w_oihw_masked, gamma, beta, kernel_size, eps=1e-5):
    """Pallas version of Block.forward.  x_nchw: (N, C, H, W), returns NCHW."""
    N, C, H, W = x_nchw.shape
    k = kernel_size
    p = k // 2
    HW = H * W

    # Spatial zero padding folded into a single 1-D pad of the (free)
    # NCHW -> (N, C, H*W) reshape: p rows of zeros above/below plus p extra
    # elements so horizontal tap shifts stay in bounds.  Padded length is
    # rounded up to a multiple of 128 lanes.
    head = p * W + p
    L = HW + 2 * head
    Lpad = ((L + 127) // 128) * 128
    xf = jnp.pad(x_nchw.reshape(N, C, HW),
                 ((0, 0), (0, 0), (head, Lpad - HW - head)))

    # im2col weight matrix: wm[o, (kh*k + kw)*C + ci] = w[o, ci, kh, kw]
    wm = jnp.transpose(w_oihw_masked, (0, 2, 3, 1)).reshape(C, k * k * C)

    out = pl.pallas_call(
        functools.partial(_block_kernel, W=W, k=k, eps=eps),
        out_shape=jax.ShapeDtypeStruct((N, C, HW), x_nchw.dtype),
        in_specs=[pl.BlockSpec(memory_space=pltpu.MemorySpace.VMEM)] * 4,
        out_specs=pl.BlockSpec(memory_space=pltpu.MemorySpace.VMEM),
    )(xf, wm, gamma.reshape(C, 1), beta.reshape(C, 1))

    return out.reshape(N, C, H, W)


def make_mask_B(num_channels, kernel_size):
    """PixelCNN mask type 'B' on OIHW weights: keep center pixel, zero strictly
    future pixels (same row after center, and all rows below center)."""
    kc = kernel_size // 2
    mask = jnp.ones((num_channels, num_channels, kernel_size, kernel_size),
                    jnp.float32)
    mask = mask.at[:, :, kc, kc + 1:].set(0.0)
    mask = mask.at[:, :, kc + 1:, :].set(0.0)
    return mask


def reference_block(x_nchw, w_oihw_masked, gamma, beta, kernel_size, eps=1e-5):
    """Pure-JAX reference (lax conv + BN(train) + ReLU) for validation."""
    p = kernel_size // 2
    y = jax.lax.conv_general_dilated(
        x_nchw, w_oihw_masked, window_strides=(1, 1),
        padding=[(p, p), (p, p)],
        dimension_numbers=("NCHW", "OIHW", "NCHW"))
    mean = jnp.mean(y, axis=(0, 2, 3), keepdims=True)
    var = jnp.mean((y - mean) ** 2, axis=(0, 2, 3), keepdims=True)
    yn = (y - mean) / jnp.sqrt(var + eps)
    yn = yn * gamma[None, :, None, None] + beta[None, :, None, None]
    return jnp.maximum(yn, 0.0)


if __name__ == "__main__":
    num_channels = 8
    kernel_size = 3
    N, H, W = 2, 16, 16

    key = jax.random.PRNGKey(0)
    k_x, k_w = jax.random.split(key)

    # Deterministic synthetic parameters (shapes from the module __init__).
    x = jax.random.normal(k_x, (N, num_channels, H, W), jnp.float32)
    w = 0.1 * jax.random.normal(
        k_w, (num_channels, num_channels, kernel_size, kernel_size),
        jnp.float32)
    w_masked = w * make_mask_B(num_channels, kernel_size)  # maskedConv 'B'
    gamma = jnp.ones((num_channels,), jnp.float32)   # BatchNorm2d.weight
    beta = jnp.zeros((num_channels,), jnp.float32)   # BatchNorm2d.bias

    out = block_forward(x, w_masked, gamma, beta, kernel_size)
    out = jax.block_until_ready(out)

    ref = reference_block(x, w_masked, gamma, beta, kernel_size)
    assert out.shape == (N, num_channels, H, W)
    assert jnp.allclose(out, ref, rtol=1e-3, atol=1e-3), "mismatch vs reference"

    print("KERNEL_OK")
</pallas_src>

<mosaic_0001>
module attributes {stable_mosaic.version = 11 : i64} {
  func.func @_block_kernel(%arg0: memref<2x8x384xf32, #tpu.memory_space<vmem>>, %arg1: memref<8x72xf32, #tpu.memory_space<vmem>>, %arg2: memref<8x1xf32, #tpu.memory_space<vmem>>, %arg3: memref<8x1xf32, #tpu.memory_space<vmem>>, %arg4: memref<2x8x256xf32, #tpu.memory_space<vmem>>) attributes {dimension_semantics = [], scalar_prefetch = 0 : i64, scratch_operands = 0 : i64, tpu.core_type = #tpu.core_type<tc>} {
    %c0 = arith.constant 0 : index
    %c0_0 = arith.constant 0 : index
    %c0_1 = arith.constant 0 : index
    %0 = vector.load %arg0[%c0, %c0_0, %c0_1] : memref<2x8x384xf32, #tpu.memory_space<vmem>>, vector<2x8x384xf32>
    %1 = tpu.iota {dimensions = array<i32: 2>} : vector<1x1x256xi32>
    %c16_i32 = arith.constant 16 : i32
    %c0_i32 = arith.constant 0 : i32
    %2 = arith.cmpi eq, %c16_i32, %c0_i32 : i32
    %c1_i32 = arith.constant 1 : i32
    %3 = arith.select %2, %c1_i32, %c16_i32 : i32
    %4 = vector.broadcast %3 : i32 to vector<1x1x256xi32>
    %5 = arith.remsi %1, %4 : vector<1x1x256xi32>
    %c0_i32_2 = arith.constant 0 : i32
    %6 = vector.broadcast %c0_i32_2 : i32 to vector<1x1x256xi32>
    %7 = arith.cmpi ne, %5, %6 : vector<1x1x256xi32>
    %c0_i32_3 = arith.constant 0 : i32
    %8 = vector.broadcast %c0_i32_3 : i32 to vector<1x1x256xi32>
    %9 = arith.cmpi slt, %5, %8 : vector<1x1x256xi32>
    %c0_i32_4 = arith.constant 0 : i32
    %10 = arith.cmpi slt, %3, %c0_i32_4 : i32
    %11 = vector.broadcast %10 : i1 to vector<1x1x256xi1>
    %12 = vector.broadcast %11 : vector<1x1x256xi1> to vector<1x1x256xi1>
    %13 = arith.xori %9, %12 : vector<1x1x256xi1>
    %14 = arith.andi %13, %7 : vector<1x1x256xi1>
    %15 = vector.broadcast %3 : i32 to vector<1x1x256xi32>
    %16 = arith.addi %5, %15 : vector<1x1x256xi32>
    %17 = arith.select %14, %16, %5 : vector<1x1x256xi1>, vector<1x1x256xi32>
    %18 = vector.extract_strided_slice %0 {offsets = [0, 0, 0], sizes = [2, 8, 256], strides = [1, 1, 1]} : vector<2x8x384xf32> to vector<2x8x256xf32>
    %c-1_i32 = arith.constant -1 : i32
    %19 = vector.broadcast %c-1_i32 : i32 to vector<1x1x256xi32>
    %20 = arith.addi %17, %19 : vector<1x1x256xi32>
    %c0_i32_5 = arith.constant 0 : i32
    %21 = vector.broadcast %c0_i32_5 : i32 to vector<1x1x256xi32>
    %22 = arith.cmpi sge, %20, %21 : vector<1x1x256xi32>
    %c-1_i32_6 = arith.constant -1 : i32
    %23 = vector.broadcast %c-1_i32_6 : i32 to vector<1x1x256xi32>
    %24 = arith.addi %17, %23 : vector<1x1x256xi32>
    %c16_i32_7 = arith.constant 16 : i32
    %25 = vector.broadcast %c16_i32_7 : i32 to vector<1x1x256xi32>
    %26 = arith.cmpi slt, %24, %25 : vector<1x1x256xi32>
    %27 = arith.andi %22, %26 : vector<1x1x256xi1>
    %cst = arith.constant 0.000000e+00 : f32
    %28 = vector.shape_cast %27 : vector<1x1x256xi1> to vector<1x1x256xi1>
    %29 = vector.broadcast %28 : vector<1x1x256xi1> to vector<2x8x256xi1>
    %30 = vector.broadcast %cst : f32 to vector<2x8x256xf32>
    %31 = arith.select %29, %18, %30 : vector<2x8x256xi1>, vector<2x8x256xf32>
    %32 = vector.extract_strided_slice %0 {offsets = [0, 0, 1], sizes = [2, 8, 256], strides = [1, 1, 1]} : vector<2x8x384xf32> to vector<2x8x256xf32>
    %33 = vector.extract_strided_slice %0 {offsets = [0, 0, 2], sizes = [2, 8, 256], strides = [1, 1, 1]} : vector<2x8x384xf32> to vector<2x8x256xf32>
    %c1_i32_8 = arith.constant 1 : i32
    %34 = vector.broadcast %c1_i32_8 : i32 to vector<1x1x256xi32>
    %35 = arith.addi %17, %34 : vector<1x1x256xi32>
    %c0_i32_9 = arith.constant 0 : i32
    %36 = vector.broadcast %c0_i32_9 : i32 to vector<1x1x256xi32>
    %37 = arith.cmpi sge, %35, %36 : vector<1x1x256xi32>
    %c1_i32_10 = arith.constant 1 : i32
    %38 = vector.broadcast %c1_i32_10 : i32 to vector<1x1x256xi32>
    %39 = arith.addi %17, %38 : vector<1x1x256xi32>
    %c16_i32_11 = arith.constant 16 : i32
    %40 = vector.broadcast %c16_i32_11 : i32 to vector<1x1x256xi32>
    %41 = arith.cmpi slt, %39, %40 : vector<1x1x256xi32>
    %42 = arith.andi %37, %41 : vector<1x1x256xi1>
    %cst_12 = arith.constant 0.000000e+00 : f32
    %43 = vector.shape_cast %42 : vector<1x1x256xi1> to vector<1x1x256xi1>
    %44 = vector.broadcast %43 : vector<1x1x256xi1> to vector<2x8x256xi1>
    %45 = vector.broadcast %cst_12 : f32 to vector<2x8x256xf32>
    %46 = arith.select %44, %33, %45 : vector<2x8x256xi1>, vector<2x8x256xf32>
    %47 = vector.extract_strided_slice %0 {offsets = [0, 0, 16], sizes = [2, 8, 256], strides = [1, 1, 1]} : vector<2x8x384xf32> to vector<2x8x256xf32>
    %c-1_i32_13 = arith.constant -1 : i32
    %48 = vector.broadcast %c-1_i32_13 : i32 to vector<1x1x256xi32>
    %49 = arith.addi %17, %48 : vector<1x1x256xi32>
    %c0_i32_14 = arith.constant 0 : i32
    %50 = vector.broadcast %c0_i32_14 : i32 to vector<1x1x256xi32>
    %51 = arith.cmpi sge, %49, %50 : vector<1x1x256xi32>
    %c-1_i32_15 = arith.constant -1 : i32
    %52 = vector.broadcast %c-1_i32_15 : i32 to vector<1x1x256xi32>
    %53 = arith.addi %17, %52 : vector<1x1x256xi32>
    %c16_i32_16 = arith.constant 16 : i32
    %54 = vector.broadcast %c16_i32_16 : i32 to vector<1x1x256xi32>
    %55 = arith.cmpi slt, %53, %54 : vector<1x1x256xi32>
    %56 = arith.andi %51, %55 : vector<1x1x256xi1>
    %cst_17 = arith.constant 0.000000e+00 : f32
    %57 = vector.shape_cast %56 : vector<1x1x256xi1> to vector<1x1x256xi1>
    %58 = vector.broadcast %57 : vector<1x1x256xi1> to vector<2x8x256xi1>
    %59 = vector.broadcast %cst_17 : f32 to vector<2x8x256xf32>
    %60 = arith.select %58, %47, %59 : vector<2x8x256xi1>, vector<2x8x256xf32>
    %61 = vector.extract_strided_slice %0 {offsets = [0, 0, 17], sizes = [2, 8, 256], strides = [1, 1, 1]} : vector<2x8x384xf32> to vector<2x8x256xf32>
    %62 = vector.extract_strided_slice %0 {offsets = [0, 0, 18], sizes = [2, 8, 256], strides = [1, 1, 1]} : vector<2x8x384xf32> to vector<2x8x256xf32>
    %c1_i32_18 = arith.constant 1 : i32
    %63 = vector.broadcast %c1_i32_18 : i32 to vector<1x1x256xi32>
    %64 = arith.addi %17, %63 : vector<1x1x256xi32>
    %c0_i32_19 = arith.constant 0 : i32
    %65 = vector.broadcast %c0_i32_19 : i32 to vector<1x1x256xi32>
    %66 = arith.cmpi sge, %64, %65 : vector<1x1x256xi32>
    %c1_i32_20 = arith.constant 1 : i32
    %67 = vector.broadcast %c1_i32_20 : i32 to vector<1x1x256xi32>
    %68 = arith.addi %17, %67 : vector<1x1x256xi32>
    %c16_i32_21 = arith.constant 16 : i32
    %69 = vector.broadcast %c16_i32_21 : i32 to vector<1x1x256xi32>
    %70 = arith.cmpi slt, %68, %69 : vector<1x1x256xi32>
    %71 = arith.andi %66, %70 : vector<1x1x256xi1>
    %cst_22 = arith.constant 0.000000e+00 : f32
    %72 = vector.shape_cast %71 : vector<1x1x256xi1> to vector<1x1x256xi1>
    %73 = vector.broadcast %72 : vector<1x1x256xi1> to vector<2x8x256xi1>
    %74 = vector.broadcast %cst_22 : f32 to vector<2x8x256xf32>
    %75 = arith.select %73, %62, %74 : vector<2x8x256xi1>, vector<2x8x256xf32>
    %76 = vector.extract_strided_slice %0 {offsets = [0, 0, 32], sizes = [2, 8, 256], strides = [1, 1, 1]} : vector<2x8x384xf32> to vector<2x8x256xf32>
    %c-1_i32_23 = arith.constant -1 : i32
    %77 = vector.broadcast %c-1_i32_23 : i32 to vector<1x1x256xi32>
    %78 = arith.addi %17, %77 : vector<1x1x256xi32>
    %c0_i32_24 = arith.constant 0 : i32
    %79 = vector.broadcast %c0_i32_24 : i32 to vector<1x1x256xi32>
    %80 = arith.cmpi sge, %78, %79 : vector<1x1x256xi32>
    %c-1_i32_25 = arith.constant -1 : i32
    %81 = vector.broadcast %c-1_i32_25 : i32 to vector<1x1x256xi32>
    %82 = arith.addi %17, %81 : vector<1x1x256xi32>
    %c16_i32_26 = arith.constant 16 : i32
    %83 = vector.broadcast %c16_i32_26 : i32 to vector<1x1x256xi32>
    %84 = arith.cmpi slt, %82, %83 : vector<1x1x256xi32>
    %85 = arith.andi %80, %84 : vector<1x1x256xi1>
    %cst_27 = arith.constant 0.000000e+00 : f32
    %86 = vector.shape_cast %85 : vector<1x1x256xi1> to vector<1x1x256xi1>
    %87 = vector.broadcast %86 : vector<1x1x256xi1> to vector<2x8x256xi1>
    %88 = vector.broadcast %cst_27 : f32 to vector<2x8x256xf32>
    %89 = arith.select %87, %76, %88 : vector<2x8x256xi1>, vector<2x8x256xf32>
    %90 = vector.extract_strided_slice %0 {offsets = [0, 0, 33], sizes = [2, 8, 256], strides = [1, 1, 1]} : vector<2x8x384xf32> to vector<2x8x256xf32>
    %91 = vector.extract_strided_slice %0 {offsets = [0, 0, 34], sizes = [2, 8, 256], strides = [1, 1, 1]} : vector<2x8x384xf32> to vector<2x8x256xf32>
    %c1_i32_28 = arith.constant 1 : i32
    %92 = vector.broadcast %c1_i32_28 : i32 to vector<1x1x256xi32>
    %93 = arith.addi %17, %92 : vector<1x1x256xi32>
    %c0_i32_29 = arith.constant 0 : i32
    %94 = vector.broadcast %c0_i32_29 : i32 to vector<1x1x256xi32>
    %95 = arith.cmpi sge, %93, %94 : vector<1x1x256xi32>
    %c1_i32_30 = arith.constant 1 : i32
    %96 = vector.broadcast %c1_i32_30 : i32 to vector<1x1x256xi32>
    %97 = arith.addi %17, %96 : vector<1x1x256xi32>
    %c16_i32_31 = arith.constant 16 : i32
    %98 = vector.broadcast %c16_i32_31 : i32 to vector<1x1x256xi32>
    %99 = arith.cmpi slt, %97, %98 : vector<1x1x256xi32>
    %100 = arith.andi %95, %99 : vector<1x1x256xi1>
    %cst_32 = arith.constant 0.000000e+00 : f32
    %101 = vector.shape_cast %100 : vector<1x1x256xi1> to vector<1x1x256xi1>
    %102 = vector.broadcast %101 : vector<1x1x256xi1> to vector<2x8x256xi1>
    %103 = vector.broadcast %cst_32 : f32 to vector<2x8x256xf32>
    %104 = arith.select %102, %91, %103 : vector<2x8x256xi1>, vector<2x8x256xf32>
    %105 = tpu.concatenate %31, %32, %46, %60, %61, %75, %89, %90, %104 in 1 : vector<2x8x256xf32>, vector<2x8x256xf32>, vector<2x8x256xf32>, vector<2x8x256xf32>, vector<2x8x256xf32>, vector<2x8x256xf32>, vector<2x8x256xf32>, vector<2x8x256xf32>, vector<2x8x256xf32> -> vector<2x72x256xf32>
    %c0_33 = arith.constant 0 : index
    %c0_34 = arith.constant 0 : index
    %106 = vector.load %arg1[%c0_33, %c0_34] : memref<8x72xf32, #tpu.memory_space<vmem>>, vector<8x72xf32>
    %107 = vector.shape_cast %106 : vector<8x72xf32> to vector<1x8x72xf32>
    %108 = vector.shape_cast %107 : vector<1x8x72xf32> to vector<1x8x72xf32>
    %109 = vector.broadcast %108 : vector<1x8x72xf32> to vector<2x8x72xf32>
    %cst_35 = arith.constant dense<0.000000e+00> : vector<2x8x256xf32>
    %110 = tpu.matmul %109, %105, %cst_35 {dimension_numbers = #tpu.dot_dimension_numbers<[2], [1], [1], [2], [0, 0, 0, 1, 1, 2], [0], [0]>} : vector<2x8x72xf32>, vector<2x72x256xf32>, vector<2x8x256xf32> -> vector<2x8x256xf32>
    %cst_36 = arith.constant dense<0.000000e+00> : vector<2x8xf32>
    %111 = vector.multi_reduction <add>, %110, %cst_36 [2] : vector<2x8x256xf32> to vector<2x8xf32>
    %112 = vector.shape_cast %111 : vector<2x8xf32> to vector<2x8x1xf32>
    %cst_37 = arith.constant dense<0.000000e+00> : vector<8x1xf32>
    %113 = vector.multi_reduction <add>, %112, %cst_37 [0] : vector<2x8x1xf32> to vector<8x1xf32>
    %114 = vector.shape_cast %113 : vector<8x1xf32> to vector<1x8x1xf32>
    %cst_38 = arith.constant 5.120000e+02 : f32
    %115 = vector.broadcast %cst_38 : f32 to vector<1x8x1xf32>
    %116 = arith.divf %114, %115 : vector<1x8x1xf32>
    %117 = vector.broadcast %116 : vector<1x8x1xf32> to vector<2x8x256xf32>
    %118 = arith.subf %110, %117 : vector<2x8x256xf32>
    %119 = arith.mulf %118, %118 : vector<2x8x256xf32>
    %cst_39 = arith.constant dense<0.000000e+00> : vector<2x8xf32>
    %120 = vector.multi_reduction <add>, %119, %cst_39 [2] : vector<2x8x256xf32> to vector<2x8xf32>
    %121 = vector.shape_cast %120 : vector<2x8xf32> to vector<2x8x1xf32>
    %cst_40 = arith.constant dense<0.000000e+00> : vector<8x1xf32>
    %122 = vector.multi_reduction <add>, %121, %cst_40 [0] : vector<2x8x1xf32> to vector<8x1xf32>
    %123 = vector.shape_cast %122 : vector<8x1xf32> to vector<1x8x1xf32>
    %cst_41 = arith.constant 5.120000e+02 : f32
    %124 = vector.broadcast %cst_41 : f32 to vector<1x8x1xf32>
    %125 = arith.divf %123, %124 : vector<1x8x1xf32>
    %cst_42 = arith.constant 9.99999974E-6 : f32
    %126 = vector.broadcast %cst_42 : f32 to vector<1x8x1xf32>
    %127 = arith.addf %125, %126 : vector<1x8x1xf32>
    %128 = math.rsqrt %127 : vector<1x8x1xf32>
    %c0_43 = arith.constant 0 : index
    %c0_44 = arith.constant 0 : index
    %129 = vector.load %arg2[%c0_43, %c0_44] : memref<8x1xf32, #tpu.memory_space<vmem>>, vector<8x1xf32>
    %130 = vector.shape_cast %129 : vector<8x1xf32> to vector<1x8x1xf32>
    %131 = arith.mulf %130, %128 : vector<1x8x1xf32>
    %c0_45 = arith.constant 0 : index
    %c0_46 = arith.constant 0 : index
    %132 = vector.load %arg3[%c0_45, %c0_46] : memref<8x1xf32, #tpu.memory_space<vmem>>, vector<8x1xf32>
    %133 = vector.shape_cast %132 : vector<8x1xf32> to vector<1x8x1xf32>
    %134 = vector.broadcast %131 : vector<1x8x1xf32> to vector<2x8x256xf32>
    %135 = arith.mulf %118, %134 : vector<2x8x256xf32>
    %136 = vector.broadcast %133 : vector<1x8x1xf32> to vector<2x8x256xf32>
    %137 = arith.addf %135, %136 : vector<2x8x256xf32>
    %cst_47 = arith.constant 0.000000e+00 : f32
    %138 = vector.broadcast %cst_47 : f32 to vector<2x8x256xf32>
    %139 = arith.maximumf %137, %138 : vector<2x8x256xf32>
    %c0_48 = arith.constant 0 : index
    %c0_49 = arith.constant 0 : index
    %c0_50 = arith.constant 0 : index
    %140 = vector.load %arg4[%c0_48, %c0_49, %c0_50] : memref<2x8x256xf32, #tpu.memory_space<vmem>>, vector<2x8x256xf32>
    tpu.vector_store %arg4[%c0_48, %c0_49, %c0_50], %139 {strides = array<i32>} : memref<2x8x256xf32, #tpu.memory_space<vmem>>, vector<2x8x256xf32>,
    return
  }
}

</mosaic_0001>

<bundles_post_ra>
// kernel: tpu_custom_call.1
= control target key start
LH: loop header
LB: loop body
LE: loop exit
PB: predicated region body
PF: predicated region fallthrough
CT: control target
= control target key end

     0   :  { %9 = vsyncpa [#allocation3], 0  ;;  %s803_s0 = inlined_call_operand.hbm [shape: f32[2,8,384], index: 0, kind: input, shape index: {}]   ;;  %s804_s1 = inlined_call_operand.vmem [shape: f32[8,72], index: 1, kind: input, shape index: {}]   ;;  %s805_s2 = inlined_call_operand.vmem [shape: f32[8,1], index: 2, kind: input, shape index: {}]   ;;  %s806_s3 = inlined_call_operand.vmem [shape: f32[8,1], index: 3, kind: input, shape index: {}]   ;;  %s807_s4 = inlined_call_operand.hbm [shape: f32[2,8,256], index: 4, kind: output, shape index: {}]  }
   0x1   :  { %10 = vsyncpa [#allocation4], 0  ;;  %s15_s17 = sshll.u32 %s803_s0, 4  ;;  %s611_s18 = smov [#allocation2]   ;;  %s16_s17 = int_to_ptr.hbm [resolvable:$true] %s15_s17 }
   0x2   :  { %s17_s19 = sshll.u32 %s611_s18, 4  ;;  %s612_s20 = smov 384   ;;  %s18_s19 = int_to_ptr.vmem [resolvable:$true] %s17_s19 }
   0x3   :  { %s613_s21 = smov 24  }
   0x4   :  { %23 = dma.hbm_to_vmem [thread:$0]  %s16_s17, 768, %s18_s19, [#allocation3], %s612_s20, %s612_s20, %s613_s21  }
   0x5   :  { %607 = dma.done.wait [#allocation3], 768  }
   0x6   :  { %608 = vsyncadd [#allocation3], 4294966528  ;;  %v39_v0 = vld [vmem:[#allocation2 + $0x28] sm:$0xff]  ;;  %v655_v1 = vld [vmem:[#allocation2 + $0x18] sm:$0xff]  ;;  %s614_s22 = smov 94   ;;  %s615_s0 = smov 95   ;;  %v40_v11 = vlaneseq }
   0x7   :  { %211 = vrot.lane.b32.xlu1 %v39_v0, %s614_s22  ;;  %207 = vrot.lane.b32.xlu0 %v655_v1, %s614_s22  ;;  %v658_v2 = vld [vmem:[#allocation2] sm:$0xff]  ;;  %s616_s23 = smov 96   ;;  %s617_s24 = smov 110   ;;  %v36_v6 = vld [vmem:[#allocation2 + $0x10] sm:$0xff]  ;;  %v671_v7 = vld [vmem:[#allocation2 + $0x8] sm:$0xff]  ;;  %vm213_vm0 = vcmask 769024  }
   0x8   :  { %v660_v3 = vld [vmem:[#allocation2 + $0x20] sm:$0xff]  ;;  %v513_v4 = vpack.i.bf16 %v658_v2, %v39_v0  ;;  %s618_s25 = smov 111   ;;  %v528_v8 = vpack.i.bf16 %v36_v6, %v671_v7  ;;  %s619_s26 = smov 112   ;;  %v41_v12 = vand.u32 127, %v40_v11  ;;  %vm280_vm3 = vcmask 777216  }
   0x9   :  { %v508_v5 = vpack.i.bf16 %v660_v3, %v655_v1  ;;  %s620_s27 = smov 126   ;;  %s621_s28 = smov 127   ;;  %vm188_vm4 = vcmask 785408   ;;  %vm163_vm7 = vcmask 900096   ;;  %vm259_vm8 = vcmask 908288  }
   0xa   :  { %514 = vrot.lane.b32.xlu2 %v513_v4, %s615_s0  ;;  %v42_v14 = vadd.s32 128, %v41_v12  ;;  %v47_v15 = vand.u32 15, %v41_v12  ;;  %vm138_vm9 = vcmask 916480   ;;  %vm113_vm10 = vcmask 1031168   ;;  %s625_s11 = smov 256   ;;  %s626_s12 = smov 16  }
   0xb   :  { %vm238_vm11 = vcmask 1039360   ;;  %vm290_vm12 = vcmask 588800  }
   0xc   :  { %v54_v16 = vand.u32 15, %v42_v14  ;;  %v689_v20 = vadd.s32 1, %v47_v15  ;;  %v704_v32 = vadd.s32 4294967295, %v47_v15 }
   0xe   :  { %v691_v21 = vadd.s32 1, %v54_v16  ;;  %vm87_vm1 = vcmp.lt.s32.totalorder %v689_v20, 16  ;;  %v706_v33 = vadd.s32 4294967295, %v54_v16  ;;  %vm69_vm5 = vcmp.ge.s32.totalorder %v704_v32, 0 }
   0xf   :  { %509 = vrot.lane.b32.xlu1 %v508_v5, %s615_s0  ;;  %209 = vrot.lane.b32.xlu0 %v660_v3, %s614_s22 }
  0x10   :  { %vm88_vm2 = vcmp.lt.s32.totalorder %v691_v21, 16  ;;  %vm70_vm6 = vcmp.ge.s32.totalorder %v706_v33, 0 }
  0x12   :  { %182 = vrot.lane.b32.xlu2 %v655_v1, %s616_s23 }
  0x17   :  { %186 = vrot.lane.b32.xlu1 %v39_v0, %s616_s23  ;;  %184 = vrot.lane.b32.xlu0 %v660_v3, %s616_s23 }
  0x1a   :  { %157 = vrot.lane.b32.xlu2 %v655_v1, %s617_s24 }
  0x1f   :  { %161 = vrot.lane.b32.xlu1 %v39_v0, %s617_s24  ;;  %159 = vrot.lane.b32.xlu0 %v660_v3, %s617_s24 }
  0x22   :  { %201 = vrot.lane.b32.xlu2 %v658_v2, %s614_s22 }
  0x27   :  { %205 = vrot.lane.b32.xlu1 %v36_v6, %s614_s22  ;;  %203 = vrot.lane.b32.xlu0 %v671_v7, %s614_s22 }
  0x2a   :  { %519 = vrot.lane.b32.xlu2 %v508_v5, %s618_s25 }
  0x2f   :  { %529 = vrot.lane.b32.xlu1 %v528_v8, %s615_s0  ;;  %524 = vrot.lane.b32.xlu0 %v513_v4, %s618_s25 }
  0x32   :  { %132 = vrot.lane.b32.xlu2 %v655_v1, %s619_s26 }
  0x37   :  { %136 = vrot.lane.b32.xlu1 %v39_v0, %s619_s26  ;;  %134 = vrot.lane.b32.xlu0 %v660_v3, %s619_s26 }
  0x3a   :  { %176 = vrot.lane.b32.xlu2 %v658_v2, %s616_s23 }
  0x3f   :  { %180 = vrot.lane.b32.xlu1 %v36_v6, %s616_s23  ;;  %178 = vrot.lane.b32.xlu0 %v671_v7, %s616_s23 }
  0x42   :  { %107 = vrot.lane.b32.xlu2 %v655_v1, %s620_s27 }
  0x47   :  { %111 = vrot.lane.b32.xlu1 %v39_v0, %s620_s27  ;;  %109 = vrot.lane.b32.xlu0 %v660_v3, %s620_s27 }
  0x4a   :  { %151 = vrot.lane.b32.xlu2 %v658_v2, %s617_s24 }
  0x4f   :  { %155 = vrot.lane.b32.xlu1 %v36_v6, %s617_s24  ;;  %153 = vrot.lane.b32.xlu0 %v671_v7, %s617_s24 }
  0x52   :  { %534 = vrot.lane.b32.xlu2 %v508_v5, %s621_s28 }
  0x57   :  { %544 = vrot.lane.b32.xlu1 %v528_v8, %s618_s25  ;;  %539 = vrot.lane.b32.xlu0 %v513_v4, %s621_s28 }
  0x5a   :  { %126 = vrot.lane.b32.xlu2 %v658_v2, %s619_s26 }
  0x5f   :  { %130 = vrot.lane.b32.xlu1 %v36_v6, %s619_s26  ;;  %128 = vrot.lane.b32.xlu0 %v671_v7, %s619_s26 }
  0x62   :  { %101 = vrot.lane.b32.xlu2 %v658_v2, %s620_s27 }
  0x64   :  { %v686_v9 = vpop.permute.xlu2 %514 }
  0x65   :  { %v516_v22 = vunpack.i.l.bf16 %v686_v9  ;;  %v517_v54 = vunpack.i.h.bf16 %v686_v9 }
  0x67   :  { %105 = vrot.lane.b32.xlu1 %v36_v6, %s620_s27  ;;  %103 = vrot.lane.b32.xlu0 %v671_v7, %s620_s27 }
  0x6a   :  { %549 = vrot.lane.b32.xlu2 %v528_v8, %s621_s28 }
  0x6c   :  { %v183_v10 = vpop.permute.xlu2 %182 }
  0x74   :  { %v158_v13 = vpop.permute.xlu2 %157 }
  0x79   :  { %v212_v17 = vpop.permute.xlu1 %211  ;;  %v208_v18 = vpop.permute.xlu0 %207 }
  0x7c   :  { %v202_v19 = vpop.permute.xlu2 %201 }
  0x81   :  { %v510_v23 = vpop.permute.xlu1 %509  ;;  %v210_v24 = vpop.permute.xlu0 %209 }
  0x82   :  { %v512_v25 = vunpack.i.h.bf16 %v510_v23  ;;  %v511_v26 = vunpack.i.l.bf16 %v510_v23  ;;  %v216_v27 = vsel %vm213_vm0, %v208_v18, %v210_v24  ;;  %v217_v28 = vsel %vm213_vm0, %v210_v24, %v212_v17  ;;  %v289_v18 = vld [vmem:[%s804_s1] sm:$0xff] }
  0x83   :  { %478 = vmatpush.msk.msra.mxu2 %vm87_vm1, %v216_v27  ;;  %485 = vmatpush.msk.msra.mxu3 %vm88_vm2, %v217_v28 }
  0x84   :  { %v283_v29 = vsel %vm280_vm3, %v511_v26, %v512_v25  ;;  %v284_v30 = vsel %vm280_vm3, %v512_v25, %v516_v22  ;;  %v520_v31 = vpop.permute.xlu2 %519 }
  0x85   :  { %342 = vmatpush.msra.mxu2 %v283_v29  ;;  %362 = vmatpush.msra.mxu3 %v284_v30  ;;  %v522_v39 = vunpack.i.h.bf16 %v520_v31  ;;  %v521_v40 = vunpack.i.l.bf16 %v520_v31 }
  0x87   :  { %v262_v45 = vsel %vm259_vm8, %v521_v40, %v522_v39 }
  0x89   :  { %v187_v34 = vpop.permute.xlu1 %186  ;;  %v185_v35 = vpop.permute.xlu0 %184 }
  0x8a   :  { %v191_v36 = vsel %vm188_vm4, %v183_v10, %v185_v35  ;;  %v192_v37 = vsel %vm188_vm4, %v185_v35, %v187_v34 }
  0x8b   :  { %479 = vmatpush.msk.msra.mxu2 %vm69_vm5, %v191_v36  ;;  %486 = vmatpush.msk.msra.mxu3 %vm70_vm6, %v192_v37 }
  0x8c   :  { %v133_v38 = vpop.permute.xlu2 %132 }
  0x91   :  { %v162_v41 = vpop.permute.xlu1 %161  ;;  %v160_v42 = vpop.permute.xlu0 %159 }
  0x92   :  { %v166_v43 = vsel %vm163_vm7, %v158_v13, %v160_v42  ;;  %v167_v44 = vsel %vm163_vm7, %v160_v42, %v162_v41 }
  0x93   :  { %480 = vmatpush.msk.msra.mxu2 %vm87_vm1, %v166_v43  ;;  %487 = vmatpush.msk.msra.mxu3 %vm88_vm2, %v167_v44 }
  0x94   :  { %v177_v46 = vpop.permute.xlu2 %176 }
  0x95   :  { %345 = vmatpush.msra.mxu2 %v262_v45 }
  0x99   :  { %v206_v47 = vpop.permute.xlu1 %205  ;;  %v204_v48 = vpop.permute.xlu0 %203 }
  0x9a   :  { %v214_v49 = vsel %vm213_vm0, %v202_v19, %v204_v48  ;;  %v215_v50 = vsel %vm213_vm0, %v204_v48, %v206_v47 }
  0x9b   :  { %464 = vmatpush.msk.msra.mxu0 %vm87_vm1, %v214_v49  ;;  %471 = vmatpush.msk.msra.mxu1 %vm88_vm2, %v215_v50 }
  0x9c   :  { %v108_v51 = vpop.permute.xlu2 %107 }
  0xa1   :  { %v530_v52 = vpop.permute.xlu1 %529  ;;  %v525_v53 = vpop.permute.xlu0 %524 }
  0xa2   :  { %v532_v55 = vunpack.i.h.bf16 %v530_v52  ;;  %v531_v56 = vunpack.i.l.bf16 %v530_v52  ;;  %v526_v57 = vunpack.i.l.bf16 %v525_v53  ;;  %v527_v28 = vunpack.i.h.bf16 %v525_v53 }
  0xa4   :  { %v281_v58 = vsel %vm280_vm3, %v517_v54, %v531_v56  ;;  %v282_v59 = vsel %vm280_vm3, %v531_v56, %v532_v55  ;;  %v263_v60 = vsel %vm259_vm8, %v522_v39, %v526_v57  ;;  %v152_v4 = vpop.permute.xlu2 %151  ;;  %v622_v54 = vmov 512.0  }
  0xa5   :  { %302 = vmatpush.msra.mxu0 %v281_v58  ;;  %322 = vmatpush.msra.mxu1 %v282_v59  ;;  %555 = vrcp.f32 %v622_v54 }
  0xa6   :  { %365 = vmatpush.msra.mxu3 %v263_v60 }
  0xa9   :  { %v137_v61 = vpop.permute.xlu1 %136  ;;  %v135_v62 = vpop.permute.xlu0 %134 }
  0xaa   :  { %v141_v63 = vsel %vm138_vm9, %v133_v38, %v135_v62  ;;  %v142_v0 = vsel %vm138_vm9, %v135_v62, %v137_v61 }
  0xab   :  { %481 = vmatpush.msk.msra.mxu2 %vm69_vm5, %v141_v63  ;;  %488 = vmatpush.msk.msra.mxu3 %vm70_vm6, %v142_v0  ;;  %v556_v32 = vpop.eup %555 }
  0xac   :  { %v535_v10 = vpop.permute.xlu2 %534  ;;  %vm386_vm13 = vweird.f32 %v556_v32 }
  0xad   :  { %v537_v11 = vunpack.i.h.bf16 %v535_v10  ;;  %v536_v12 = vunpack.i.l.bf16 %v535_v10 }
  0xaf   :  { %v241_v17 = vsel %vm238_vm11, %v536_v12, %v537_v11 }
  0xb1   :  { %v181_v5 = vpop.permute.xlu1 %180  ;;  %v179_v6 = vpop.permute.xlu0 %178 }
  0xb2   :  { %v189_v8 = vsel %vm188_vm4, %v177_v46, %v179_v6  ;;  %v190_v9 = vsel %vm188_vm4, %v179_v6, %v181_v5 }
  0xb3   :  { %465 = vmatpush.msk.msra.mxu0 %vm69_vm5, %v189_v8  ;;  %472 = vmatpush.msk.msra.mxu1 %vm70_vm6, %v190_v9 }
  0xb4   :  { %v127_v19 = vpop.permute.xlu2 %126 }
  0xb9   :  { %v112_v13 = vpop.permute.xlu1 %111  ;;  %v110_v14 = vpop.permute.xlu0 %109 }
  0xba   :  { %v116_v15 = vsel %vm113_vm10, %v108_v51, %v110_v14  ;;  %v117_v16 = vsel %vm113_vm10, %v110_v14, %v112_v13  ;;  %v418_v13 = vld [vmem:[%s806_s3] sm:$0xff]  ;;  %s624_s3 = smov [#allocation5]  }
  0xbb   :  { %482 = vmatpush.msk.msra.mxu2 %vm87_vm1, %v116_v15  ;;  %489 = vmatpush.msk.msra.mxu3 %vm88_vm2, %v117_v16  ;;  %s449_s8 = sshll.u32 %s624_s3, 4  ;;  %s450_s8 = int_to_ptr.vmem [resolvable:$true] %s449_s8 }
  0xbc   :  { %v102_v31 = vpop.permute.xlu2 %101 }
  0xbd   :  { %348 = vmatpush.msra.mxu2 %v241_v17 }
  0xbf   :  { %483 = vmatpush.msk.msra.mxu2 %vm69_vm5, %v655_v1 }
  0xc0   :  { %484 = vmatmul.msk.f32.vlgmr.msra.gmra.mxu2 %vm290_vm12, %v289_v18 }
  0xc1   :  { %v156_v22 = vpop.permute.xlu1 %155  ;;  %v154_v23 = vpop.permute.xlu0 %153 }
  0xc2   :  { %v164_v24 = vsel %vm163_vm7, %v152_v4, %v154_v23  ;;  %v165_v25 = vsel %vm163_vm7, %v154_v23, %v156_v22 }
  0xc3   :  { %466 = vmatpush.msk.msra.mxu0 %vm87_vm1, %v164_v24  ;;  %473 = vmatpush.msk.msra.mxu1 %vm88_vm2, %v165_v25 }
  0xc4   :  { %v550_v41 = vpop.permute.xlu2 %549 }
  0xc5   :  { %v552_v42 = vunpack.i.h.bf16 %v550_v41  ;;  %v551_v44 = vunpack.i.l.bf16 %v550_v41 }
  0xc7   :  { %v240_v48 = vsel %vm238_vm11, %v551_v44, %v552_v42 }
  0xc9   :  { %v545_v26 = vpop.permute.xlu1 %544  ;;  %v540_v27 = vpop.permute.xlu0 %539 }
  0xca   :  { %v547_v29 = vunpack.i.h.bf16 %v545_v26  ;;  %v546_v1 = vunpack.i.l.bf16 %v545_v26  ;;  %v541_v30 = vunpack.i.l.bf16 %v540_v27  ;;  %v542_v43 = vunpack.i.h.bf16 %v540_v27  ;;  %v416_v26 = vld [vmem:[%s805_s2] sm:$0xff]  ;;  %s451_s2 = sshll.u32 %s807_s4, 4  ;;  %s452_s2 = int_to_ptr.hbm [resolvable:$true] %s451_s2 }
  0xcc   :  { %v260_v34 = vsel %vm259_vm8, %v527_v28, %v546_v1  ;;  %v261_v35 = vsel %vm259_vm8, %v546_v1, %v547_v29  ;;  %v242_v36 = vsel %vm238_vm11, %v537_v11, %v541_v30  ;;  %v239_v49 = vsel %vm238_vm11, %v542_v43, %v551_v44 }
  0xcd   :  { %305 = vmatpush.msra.mxu0 %v260_v34  ;;  %325 = vmatpush.msra.mxu1 %v261_v35  ;;  %v623_v11 = vmov 0  }
  0xce   :  { %368 = vmatpush.msra.mxu3 %v242_v36  ;;  %553 = vset.pattern.permute.xlu0 %v623_v11 }
  0xcf   :  { %554 = vset.pattern.permute.xlu1 %v623_v11 }
  0xd0   :  { %490 = vmatpush.msk.msra.mxu3 %vm70_vm6, %v660_v3 }
  0xd1   :  { %v131_v37 = vpop.permute.xlu1 %130  ;;  %v129_v38 = vpop.permute.xlu0 %128  ;;  %491 = vmatmul.msk.f32.vlgmr.msra.gmra.mxu3 %vm290_vm12, %v289_v18 }
  0xd2   :  { %v139_v39 = vsel %vm138_vm9, %v127_v19, %v129_v38  ;;  %v140_v40 = vsel %vm138_vm9, %v129_v38, %v131_v37 }
  0xd3   :  { %467 = vmatpush.msk.msra.mxu0 %vm69_vm5, %v139_v39  ;;  %474 = vmatpush.msk.msra.mxu1 %vm70_vm6, %v140_v40 }
  0xd9   :  { %v106_v45 = vpop.permute.xlu1 %105  ;;  %v104_v3 = vpop.permute.xlu0 %103 }
  0xda   :  { %v114_v46 = vsel %vm113_vm10, %v102_v31, %v104_v3  ;;  %v115_v47 = vsel %vm113_vm10, %v104_v3, %v106_v45 }
  0xdb   :  { %468 = vmatpush.msk.msra.mxu0 %vm87_vm1, %v114_v46  ;;  %475 = vmatpush.msk.msra.mxu1 %vm88_vm2, %v115_v47 }
  0xdd   :  { %308 = vmatpush.msra.mxu0 %v239_v49  ;;  %328 = vmatpush.msra.mxu1 %v240_v48 }
  0xdf   :  { %469 = vmatpush.msk.msra.mxu0 %vm69_vm5, %v658_v2  ;;  %476 = vmatpush.msk.msra.mxu1 %vm70_vm6, %v671_v7  ;;  %v382_v2 = vmul.f32 512.0, %v556_v32 }
  0xe0   :  { %470 = vmatmul.msk.f32.vlgmr.msra.gmra.mxu0 %vm290_vm12, %v289_v18  ;;  %477 = vmatmul.msk.f32.vlgmr.msra.gmra.mxu1 %vm290_vm12, %v289_v18 }
  0xe1   :  { %v383_v55 = vsub.f32 1.0, %v382_v2 }
  0xe3   :  { %v384_v56 = vmul.f32 %v556_v32, %v383_v55 }
  0xe5   :  { %v385_v33 = vadd.f32 %v556_v32, %v384_v56 }
  0xe7   :  { %v387_v58 = vsel %vm386_vm13, %v556_v32, %v385_v33 }
 0x143   :  { %v351_v20 = vpop.f32.mrf.mxu2 }
 0x154   :  { %v371_v50 = vpop.f32.mrf.mxu3 }
 0x155   :  { %v377_v21 = vadd.f32 %v371_v50, %v351_v20 }
 0x157   :  { %378 = vadd.xlane.f32.xlu1 %v377_v21 }
 0x15d   :  { %v311_v51 = vpop.f32.mrf.mxu0  ;;  %v331_v52 = vpop.f32.mrf.mxu1 }
 0x15e   :  { %v374_v53 = vadd.f32 %v331_v52, %v311_v51 }
 0x160   :  { %375 = vadd.xlane.f32.xlu0 %v374_v53 }
 0x170   :  { %430 = vperm.xlu1 %554, %v418_v13  }
 0x1ca   :  { %v379_v7 = vpop.xlane.xlu1 %378 }
 0x1d3   :  { %v376_v57 = vpop.xlane.xlu0 %375 }
 0x1d4   :  { %v380_v59 = vadd.f32 %v379_v7, %v376_v57 }
 0x1d6   :  { %v388_v60 = vmul.f32 %v387_v58, %v380_v59 }
 0x1d8   :  { %v389_v61 = vsub.f32 %v311_v51, %v388_v60  ;;  %v390_v62 = vsub.f32 %v331_v52, %v388_v60  ;;  %v391_v5 = vsub.f32 %v351_v20, %v388_v60  ;;  %v392_v6 = vsub.f32 %v371_v50, %v388_v60 }
 0x1da   :  { %v393_v63 = vmul.f32 %v389_v61, %v389_v61  ;;  %v394_v0 = vmul.f32 %v390_v62, %v390_v62  ;;  %v395_v8 = vmul.f32 %v391_v5, %v391_v5  ;;  %v396_v9 = vmul.f32 %v392_v6, %v392_v6 }
 0x1dc   :  { %v397_v4 = vadd.f32 %v394_v0, %v393_v63  ;;  %v400_v10 = vadd.f32 %v396_v9, %v395_v8 }
 0x1de   :  { %398 = vadd.xlane.f32.xlu2 %v397_v4 }
 0x1e2   :  { %v431_v1 = vpop.permute.xlu1 %430 }
 0x1e6   :  { %401 = vadd.xlane.f32.xlu2 %v400_v10 }
 0x251   :  { %v399_v12 = vpop.xlane.xlu2 %398 }
 0x259   :  { %v402_v14 = vpop.xlane.xlu2 %401 }
 0x25a   :  { %v403_v15 = vadd.f32 %v402_v14, %v399_v12 }
 0x25c   :  { %v404_v16 = vmul.f32 %v403_v15, %v387_v58 }
 0x25e   :  { %v405_v17 = vadd.f32 1e-05, %v404_v16 }
 0x260   :  { %557 = vrsqrt.f32 %v405_v17  ;;  %vm412_vm15 = vweird.f32 %v405_v17 }
 0x266   :  { %v558_v18 = vpop.eup %557 }
 0x267   :  { %v407_v19 = vmul.f32 %v558_v18, %v405_v17  ;;  %vm413_vm14 = vweird.f32 %v558_v18 }
 0x268   :  { %vm414_vm0 = vmor %vm412_vm15, %vm413_vm14 }
 0x269   :  { %v408_v22 = vmul.f32 %v558_v18, %v407_v19 }
 0x26b   :  { %v409_v23 = vmul.f32 0.5, %v408_v22 }
 0x26d   :  { %v410_v24 = vsub.f32 1.5, %v409_v23 }
 0x26f   :  { %v411_v25 = vmul.f32 %v558_v18, %v410_v24 }
 0x271   :  { %v415_v27 = vsel %vm414_vm0, %v558_v18, %v411_v25 }
 0x272   :  { %v417_v28 = vmul.f32 %v416_v26, %v415_v27 }
 0x274   :  { %421 = vperm.xlu0 %553, %v417_v28  }
 0x2e6   :  { %v422_v29 = vpop.permute.xlu0 %421 }
 0x2e7   :  { %v424_v30 = vmul.f32 %v422_v29, %v389_v61  ;;  %v425_v31 = vmul.f32 %v422_v29, %v390_v62  ;;  %v426_v34 = vmul.f32 %v422_v29, %v391_v5  ;;  %v427_v35 = vmul.f32 %v422_v29, %v392_v6 }
 0x2e9   :  { %v433_v36 = vadd.f32 %v431_v1, %v424_v30  ;;  %v434_v37 = vadd.f32 %v431_v1, %v425_v31  ;;  %v435_v38 = vadd.f32 %v431_v1, %v426_v34  ;;  %v436_v39 = vadd.f32 %v431_v1, %v427_v35 }
 0x2eb   :  { %v437_v40 = vmax.f32 %v433_v36, 0.0  ;;  %v438_v41 = vmax.f32 %v434_v37, 0.0  ;;  %v439_v42 = vmax.f32 %v435_v38, 0.0  ;;  %v440_v43 = vmax.f32 %v436_v39, 0.0 }
 0x2ed   :  { %441 = vst [vmem:[#allocation5] sm:$0xff] %v437_v40 }
 0x2ee   :  { %442 = vst [vmem:[#allocation5 + $0x8] sm:$0xff] %v438_v41 }
 0x2ef   :  { %443 = vst [vmem:[#allocation5 + $0x10] sm:$0xff] %v439_v42 }
 0x2f0   :  { %444 = vst [vmem:[#allocation5 + $0x18] sm:$0xff] %v440_v43 }
 0x2f1   :  { %457 = dma.vmem_to_hbm [thread:$0]  %s450_s8, 512, %s452_s2, [#allocation4], %s625_s11, %s625_s11, %s626_s12  }
 0x2f2   :  { %609 = dma.done.wait [#allocation4], 512  }
 0x2f3   :  { %610 = vsyncadd [#allocation4], 4294966784 }
 0x2f4   :  { %462 = vsyncpa [#allocation3], 1 }
 0x2f5   :  { %463 = vsyncpa [#allocation4], 1 }

</bundles_post_ra>
